<compile_context>
chip_gen: v6e
topology: v6e:2x2x1
jax: 0.10.0
libtpu: 0.0.40
codegen_flags: <defaults>
</compile_context>

<pallas_src>
import functools

import jax
import jax.numpy as jnp
from jax.experimental import pallas as pl
from jax.experimental.pallas import tpu as pltpu

LN_EPS = 1e-5


def head_kernel(x_ref, w1_ref, b1_ref, gamma_ref, beta_ref, w2_ref, b2_ref,
                o_ref, acc_ref, *, inv_s, seq_len, ts, need_mask):
    s_idx = pl.program_id(1)

    @pl.when(s_idx == 0)
    def _init():
        acc_ref[...] = jnp.zeros_like(acc_ref)

    # Stream this (TB, TS, D) slab; accumulate the pooled sum in f32.
    x = x_ref[...]
    if need_mask:
        # Final slab is ragged: rows >= (seq_len - s_idx*ts) are out-of-bounds
        # garbage (Pallas does not zero partial blocks) -> zero them.
        rem = seq_len - s_idx * ts
        idx = jax.lax.broadcasted_iota(jnp.int32, x.shape, 1)
        x = jnp.where(idx < rem, x, 0)
    acc_ref[...] += jnp.sum(x, axis=1, dtype=jnp.float32)

    @pl.when(s_idx == pl.num_programs(1) - 1)
    def _finalize():
        # mean over the TRUE sequence length (masked padding contributes 0)
        pooled = acc_ref[...] * inv_s                                   # (TB, D)

        # drop1: identity in eval mode
        h = jnp.dot(pooled.astype(w1_ref.dtype), w1_ref[...],
                    preferred_element_type=jnp.float32)                 # (TB, H)
        h = h + b1_ref[...].astype(jnp.float32)

        # LayerNorm over last dim
        mu = jnp.mean(h, axis=-1, keepdims=True)
        var = jnp.mean((h - mu) * (h - mu), axis=-1, keepdims=True)
        hn = (h - mu) * jax.lax.rsqrt(var + LN_EPS)
        hn = (hn * gamma_ref[...].astype(jnp.float32)
              + beta_ref[...].astype(jnp.float32))

        t = jnp.tanh(hn)

        # drop2: identity in eval mode
        out = jnp.dot(t.astype(w2_ref.dtype), w2_ref[...],
                      preferred_element_type=jnp.float32)               # (TB, OUT_PAD)
        out = out + b2_ref[...].astype(jnp.float32)
        o_ref[...] = out.astype(o_ref.dtype)


def _vmem_capacity_bytes():
    try:
        return int(pltpu.get_tpu_info().vmem_capacity_bytes)
    except Exception:
        return 64 * 1024 * 1024      # conservative: v7x per-TC VMEM


def model_head(x, w1, b1, gamma, beta, w2, b2, *, tile_bytes=None):
    """x: (B, S, D) last_hidden_state. Returns (B, OUT) logits."""
    B, S, D = x.shape
    H = w1.shape[1]
    OUT = w2.shape[1]

    vmem_cap = _vmem_capacity_bytes()
    if tile_bytes is None:
        # Bigger slabs on 128-MiB-VMEM chips (v5e/v6e); keep v7x (64 MiB) lean.
        tile_bytes = (12 << 20) if vmem_cap >= (128 << 20) else (6 << 20)

    # Lane-dense output: pad the narrow (8-wide) head to a multiple of 128.
    OUT_PAD = pl.cdiv(OUT, 128) * 128
    w2p = jnp.zeros((H, OUT_PAD), w2.dtype).at[:, :OUT].set(w2)
    b2p = jnp.zeros((1, OUT_PAD), b2.dtype).at[:, :OUT].set(b2.reshape(1, OUT))

    b1 = b1.reshape(1, H)
    gamma = gamma.reshape(1, H)
    beta = beta.reshape(1, H)

    # Batch tile: >= 2 tiles whenever B > 8 so the "parallel" batch axis can
    # shard across both TensorCores on v7x.
    if B > 8:
        TB = min(128, 8 * pl.cdiv(pl.cdiv(B, 2), 8))
    else:
        TB = B

    # Sequence tile sized to the VMEM slab budget, aligned to the streaming
    # dtype's native sublane packing (8 rows f32, 16 bf16, 32 int8/fp8).
    itemsize = jnp.dtype(x.dtype).itemsize
    sub = 8 * max(1, 4 // itemsize)
    ts_budget = max(sub, tile_bytes // max(1, TB * D * itemsize))
    if ts_budget >= S:
        TS = S                       # whole sequence in one slab, no masking
    else:
        TS = max(sub, (ts_budget // sub) * sub)

    grid = (pl.cdiv(B, TB), pl.cdiv(S, TS))
    need_mask = (S % TS) != 0        # ragged final slab -> mask inside kernel

    kernel = functools.partial(head_kernel, inv_s=1.0 / S, seq_len=S, ts=TS,
                               need_mask=need_mask)

    # Explicit VMEM budget: 2x-buffered x slab + weights + output + accumulator.
    w_bytes = (w1.size * w1.dtype.itemsize + w2p.size * w2p.dtype.itemsize
               + (b1.size + gamma.size + beta.size) * b1.dtype.itemsize
               + b2p.size * b2p.dtype.itemsize)
    need = (2 * TB * TS * D * itemsize + 2 * w_bytes
            + 2 * TB * OUT_PAD * 4 + TB * D * 4)
    cap = max(32 << 20, vmem_cap - (16 << 20))
    vmem_limit = max(32 << 20, min(int(need * 1.5) + (4 << 20), cap))

    cost = pl.CostEstimate(
        flops=2 * B * S * D + 2 * B * D * H + 2 * B * H * OUT_PAD,
        transcendentals=B * H,
        bytes_accessed=int(x.size * itemsize + w_bytes + B * OUT_PAD * 4),
    )

    out_shape = jax.ShapeDtypeStruct((B, OUT_PAD), jnp.float32)
    compiler_params = pltpu.CompilerParams(
        dimension_semantics=("parallel", "arbitrary"),
        vmem_limit_bytes=int(vmem_limit))

    def build(single_buffer_weights):
        if single_buffer_weights:
            def wspec(shape):
                # constant index map -> resident; single buffer saves VMEM
                return pl.BlockSpec(shape, lambda b, s: (0, 0),
                                    pipeline_mode=pl.Buffered(1))
        else:
            def wspec(shape):
                return pl.BlockSpec(shape, lambda b, s: (0, 0))
        return pl.pallas_call(
            kernel,
            out_shape=out_shape,
            grid_spec=pltpu.PrefetchScalarGridSpec(
                num_scalar_prefetch=0,
                grid=grid,
                in_specs=[
                    # streamed hidden state (double-buffered by Pallas)
                    pl.BlockSpec((TB, TS, D), lambda b, s: (b, s, 0)),
                    # resident parameters
                    wspec((D, H)),
                    wspec((1, H)),
                    wspec((1, H)),
                    wspec((1, H)),
                    wspec((H, OUT_PAD)),
                    wspec((1, OUT_PAD)),
                ],
                # output block resident across the S reduction axis
                out_specs=pl.BlockSpec((TB, OUT_PAD), lambda b, s: (b, 0)),
                scratch_shapes=[pltpu.VMEM((TB, D), jnp.float32)],
            ),
            compiler_params=compiler_params,
            cost_estimate=cost,
        )

    args = (x, w1, b1, gamma, beta, w2p, b2p)
    try:
        out_padded = build(True)(*args)
    except Exception:
        # Fallback if this JAX build rejects single-buffered specs.
        out_padded = build(False)(*args)

    return out_padded[:, :OUT]


def reference_head(x, w1, b1, gamma, beta, w2, b2):
    pooled = jnp.mean(x.astype(jnp.float32), axis=1)
    h = pooled @ w1 + b1
    mu = jnp.mean(h, axis=-1, keepdims=True)
    var = jnp.mean((h - mu) ** 2, axis=-1, keepdims=True)
    hn = (h - mu) / jnp.sqrt(var + LN_EPS) * gamma + beta
    t = jnp.tanh(hn)
    return t @ w2 + b2


if __name__ == "__main__":
    # Small, deterministic shapes consistent with the forward pass.
    # S deliberately NOT tile-aligned to exercise the in-kernel ragged mask.
    B, S, D, H, OUT = 2, 30, 64, 32, 8

    key = jax.random.PRNGKey(0)
    kx, kw1, kb1, kw2, kb2 = jax.random.split(key, 5)

    # Backbone output (last_hidden_state) — synthetic stand-in for AutoModel.
    x = jax.random.normal(kx, (B, S, D), dtype=jnp.float32)

    w1 = jax.random.normal(kw1, (D, H), dtype=jnp.float32) * 0.05
    b1 = jax.random.normal(kb1, (1, H), dtype=jnp.float32) * 0.01
    gamma = jnp.ones((1, H), dtype=jnp.float32)     # LayerNorm weight
    beta = jnp.zeros((1, H), dtype=jnp.float32)     # LayerNorm bias
    w2 = jax.random.normal(kw2, (H, OUT), dtype=jnp.float32) * 0.05
    b2 = jax.random.normal(kb2, (1, OUT), dtype=jnp.float32) * 0.01

    ref = reference_head(x, w1, b1, gamma, beta, w2, b2)

    # (1) default slab budget: whole sequence in one step (no masking).
    out_full = jax.block_until_ready(model_head(x, w1, b1, gamma, beta, w2, b2))

    # (2) tiny slab budget: multiple S steps + ragged final slab (mask path).
    small_tile_bytes = 16 * B * D * 4                # -> TS = 16 < S = 30
    out_tiled = jax.block_until_ready(
        model_head(x, w1, b1, gamma, beta, w2, b2, tile_bytes=small_tile_bytes))

    for out in (out_full, out_tiled):
        assert out.shape == (B, OUT), out.shape
        assert jnp.allclose(out, ref, atol=1e-5, rtol=1e-5), (
            float(jnp.max(jnp.abs(out - ref))))

    print("KERNEL_OK")
</pallas_src>

<mosaic_0001>
module attributes {stable_mosaic.version = 11 : i64} {
  func.func @head_kernel(%arg0: i32, %arg1: i32, %arg2: memref<2x30x64xf32, #tpu.memory_space<vmem>>, %arg3: memref<64x32xf32, #tpu.memory_space<vmem>>, %arg4: memref<1x32xf32, #tpu.memory_space<vmem>>, %arg5: memref<1x32xf32, #tpu.memory_space<vmem>>, %arg6: memref<1x32xf32, #tpu.memory_space<vmem>>, %arg7: memref<32x128xf32, #tpu.memory_space<vmem>>, %arg8: memref<1x128xf32, #tpu.memory_space<vmem>>, %arg9: memref<2x128xf32, #tpu.memory_space<vmem>>, %arg10: memref<2x64xf32, #tpu.memory_space<vmem>>) attributes {dimension_semantics = [#tpu.dimension_semantics<parallel>, #tpu.dimension_semantics<arbitrary>], iteration_bounds = array<i64: 1, 1>, scalar_prefetch = 0 : i64, scratch_operands = 1 : i64, tpu.core_type = #tpu.core_type<tc>, window_params = [{transform_indices = @transform_0, window_bounds = array<i64: 2, 30, 64>}, {pipeline_mode = #tpu.pipeline_mode<synchronous>, transform_indices = @transform_1, window_bounds = array<i64: 64, 32>}, {pipeline_mode = #tpu.pipeline_mode<synchronous>, transform_indices = @transform_2, window_bounds = array<i64: 1, 32>}, {pipeline_mode = #tpu.pipeline_mode<synchronous>, transform_indices = @transform_3, window_bounds = array<i64: 1, 32>}, {pipeline_mode = #tpu.pipeline_mode<synchronous>, transform_indices = @transform_4, window_bounds = array<i64: 1, 32>}, {pipeline_mode = #tpu.pipeline_mode<synchronous>, transform_indices = @transform_5, window_bounds = array<i64: 32, 128>}, {pipeline_mode = #tpu.pipeline_mode<synchronous>, transform_indices = @transform_6, window_bounds = array<i64: 1, 128>}, {transform_indices = @transform_7, window_bounds = array<i64: 2, 128>}]} {
    %c0_i32 = arith.constant 0 : i32
    %0 = arith.cmpi eq, %arg1, %c0_i32 : i32
    %1 = arith.extui %0 : i1 to i32
    %c0_i32_0 = arith.constant 0 : i32
    %2 = arith.cmpi ne, %1, %c0_i32_0 : i32
    scf.if %2 {
      %cst_9 = arith.constant 0.000000e+00 : f32
      %11 = vector.broadcast %cst_9 : f32 to vector<2x64xf32>
      %c0_10 = arith.constant 0 : index
      %c0_11 = arith.constant 0 : index
      %12 = vector.load %arg10[%c0_10, %c0_11] : memref<2x64xf32, #tpu.memory_space<vmem>>, vector<2x64xf32>
      tpu.vector_store %arg10[%c0_10, %c0_11], %11 {strides = array<i32>} : memref<2x64xf32, #tpu.memory_space<vmem>>, vector<2x64xf32>,
    } else {
    }
    %c0 = arith.constant 0 : index
    %c0_1 = arith.constant 0 : index
    %c0_2 = arith.constant 0 : index
    %3 = vector.load %arg2[%c0, %c0_1, %c0_2] : memref<2x30x64xf32, #tpu.memory_space<vmem>>, vector<2x30x64xf32>
    %c0_3 = arith.constant 0 : index
    %c0_4 = arith.constant 0 : index
    %4 = vector.load %arg10[%c0_3, %c0_4] : memref<2x64xf32, #tpu.memory_space<vmem>>, vector<2x64xf32>
    %cst = arith.constant dense<0.000000e+00> : vector<2x64xf32>
    %5 = vector.multi_reduction <add>, %3, %cst [1] : vector<2x30x64xf32> to vector<2x64xf32>
    %6 = arith.addf %4, %5 : vector<2x64xf32>
    %c0_5 = arith.constant 0 : index
    %c0_6 = arith.constant 0 : index
    %7 = vector.load %arg10[%c0_5, %c0_6] : memref<2x64xf32, #tpu.memory_space<vmem>>, vector<2x64xf32>
    tpu.vector_store %arg10[%c0_5, %c0_6], %6 {strides = array<i32>} : memref<2x64xf32, #tpu.memory_space<vmem>>, vector<2x64xf32>,
    %c0_i32_7 = arith.constant 0 : i32
    %8 = arith.cmpi eq, %arg1, %c0_i32_7 : i32
    %9 = arith.extui %8 : i1 to i32
    %c0_i32_8 = arith.constant 0 : i32
    %10 = arith.cmpi ne, %9, %c0_i32_8 : i32
    scf.if %10 {
      %c0_9 = arith.constant 0 : index
      %c0_10 = arith.constant 0 : index
      %11 = vector.load %arg10[%c0_9, %c0_10] : memref<2x64xf32, #tpu.memory_space<vmem>>, vector<2x64xf32>
      %cst_11 = arith.constant 0.0333333351 : f32
      %12 = vector.broadcast %cst_11 : f32 to vector<2x64xf32>
      %13 = arith.mulf %11, %12 : vector<2x64xf32>
      %c0_12 = arith.constant 0 : index
      %c0_13 = arith.constant 0 : index
      %14 = vector.load %arg3[%c0_12, %c0_13] : memref<64x32xf32, #tpu.memory_space<vmem>>, vector<64x32xf32>
      %cst_14 = arith.constant dense<0.000000e+00> : vector<2x32xf32>
      %15 = tpu.matmul %13, %14, %cst_14 {dimension_numbers = #tpu.dot_dimension_numbers<[1], [0], [0], [1], [0, 0, 1, 1], [], []>} : vector<2x64xf32>, vector<64x32xf32>, vector<2x32xf32> -> vector<2x32xf32>
      %c0_15 = arith.constant 0 : index
      %c0_16 = arith.constant 0 : index
      %16 = vector.load %arg4[%c0_15, %c0_16] : memref<1x32xf32, #tpu.memory_space<vmem>>, vector<1x32xf32>
      %17 = vector.broadcast %16 : vector<1x32xf32> to vector<2x32xf32>
      %18 = arith.addf %15, %17 : vector<2x32xf32>
      %cst_17 = arith.constant dense<0.000000e+00> : vector<2xf32>
      %19 = vector.multi_reduction <add>, %18, %cst_17 [1] : vector<2x32xf32> to vector<2xf32>
      %20 = vector.shape_cast %19 : vector<2xf32> to vector<2x1xf32>
      %cst_18 = arith.constant 3.200000e+01 : f32
      %21 = vector.broadcast %cst_18 : f32 to vector<2x1xf32>
      %22 = arith.divf %20, %21 : vector<2x1xf32>
      %23 = vector.broadcast %22 : vector<2x1xf32> to vector<2x32xf32>
      %24 = arith.subf %18, %23 : vector<2x32xf32>
      %25 = vector.broadcast %22 : vector<2x1xf32> to vector<2x32xf32>
      %26 = arith.subf %18, %25 : vector<2x32xf32>
      %27 = arith.mulf %24, %26 : vector<2x32xf32>
      %cst_19 = arith.constant dense<0.000000e+00> : vector<2xf32>
      %28 = vector.multi_reduction <add>, %27, %cst_19 [1] : vector<2x32xf32> to vector<2xf32>
      %29 = vector.shape_cast %28 : vector<2xf32> to vector<2x1xf32>
      %cst_20 = arith.constant 3.200000e+01 : f32
      %30 = vector.broadcast %cst_20 : f32 to vector<2x1xf32>
      %31 = arith.divf %29, %30 : vector<2x1xf32>
      %32 = vector.broadcast %22 : vector<2x1xf32> to vector<2x32xf32>
      %33 = arith.subf %18, %32 : vector<2x32xf32>
      %cst_21 = arith.constant 9.99999974E-6 : f32
      %34 = vector.broadcast %cst_21 : f32 to vector<2x1xf32>
      %35 = arith.addf %31, %34 : vector<2x1xf32>
      %36 = math.rsqrt %35 : vector<2x1xf32>
      %37 = vector.broadcast %36 : vector<2x1xf32> to vector<2x32xf32>
      %38 = arith.mulf %33, %37 : vector<2x32xf32>
      %c0_22 = arith.constant 0 : index
      %c0_23 = arith.constant 0 : index
      %39 = vector.load %arg5[%c0_22, %c0_23] : memref<1x32xf32, #tpu.memory_space<vmem>>, vector<1x32xf32>
      %40 = vector.broadcast %39 : vector<1x32xf32> to vector<2x32xf32>
      %41 = arith.mulf %38, %40 : vector<2x32xf32>
      %c0_24 = arith.constant 0 : index
      %c0_25 = arith.constant 0 : index
      %42 = vector.load %arg6[%c0_24, %c0_25] : memref<1x32xf32, #tpu.memory_space<vmem>>, vector<1x32xf32>
      %43 = vector.broadcast %42 : vector<1x32xf32> to vector<2x32xf32>
      %44 = arith.addf %41, %43 : vector<2x32xf32>
      %45 = math.tanh %44 : vector<2x32xf32>
      %c0_26 = arith.constant 0 : index
      %c0_27 = arith.constant 0 : index
      %46 = vector.load %arg7[%c0_26, %c0_27] : memref<32x128xf32, #tpu.memory_space<vmem>>, vector<32x128xf32>
      %cst_28 = arith.constant dense<0.000000e+00> : vector<2x128xf32>
      %47 = tpu.matmul %45, %46, %cst_28 {dimension_numbers = #tpu.dot_dimension_numbers<[1], [0], [0], [1], [0, 0, 1, 1], [], []>} : vector<2x32xf32>, vector<32x128xf32>, vector<2x128xf32> -> vector<2x128xf32>
      %c0_29 = arith.constant 0 : index
      %c0_30 = arith.constant 0 : index
      %48 = vector.load %arg8[%c0_29, %c0_30] : memref<1x128xf32, #tpu.memory_space<vmem>>, vector<1x128xf32>
      %49 = vector.broadcast %48 : vector<1x128xf32> to vector<2x128xf32>
      %50 = arith.addf %47, %49 : vector<2x128xf32>
      %c0_31 = arith.constant 0 : index
      %c0_32 = arith.constant 0 : index
      %51 = vector.load %arg9[%c0_31, %c0_32] : memref<2x128xf32, #tpu.memory_space<vmem>>, vector<2x128xf32>
      tpu.vector_store %arg9[%c0_31, %c0_32], %50 {strides = array<i32>} : memref<2x128xf32, #tpu.memory_space<vmem>>, vector<2x128xf32>,
    } else {
    }
    return
  }
  func.func @transform_0(%arg0: i32, %arg1: i32) -> (i32, i32, i32) {
    %c0_i32 = arith.constant 0 : i32
    %c0_i32_0 = arith.constant 0 : i32
    return %arg0, %arg1, %c0_i32 : i32, i32, i32
  }
  func.func @transform_1(%arg0: i32, %arg1: i32) -> (i32, i32) {
    %c0_i32 = arith.constant 0 : i32
    %c0_i32_0 = arith.constant 0 : i32
    %c0_i32_1 = arith.constant 0 : i32
    return %c0_i32, %c0_i32_0 : i32, i32
  }
  func.func @transform_2(%arg0: i32, %arg1: i32) -> (i32, i32) {
    %c0_i32 = arith.constant 0 : i32
    %c0_i32_0 = arith.constant 0 : i32
    %c0_i32_1 = arith.constant 0 : i32
    return %c0_i32, %c0_i32_0 : i32, i32
  }
  func.func @transform_3(%arg0: i32, %arg1: i32) -> (i32, i32) {
    %c0_i32 = arith.constant 0 : i32
    %c0_i32_0 = arith.constant 0 : i32
    %c0_i32_1 = arith.constant 0 : i32
    return %c0_i32, %c0_i32_0 : i32, i32
  }
  func.func @transform_4(%arg0: i32, %arg1: i32) -> (i32, i32) {
    %c0_i32 = arith.constant 0 : i32
    %c0_i32_0 = arith.constant 0 : i32
    %c0_i32_1 = arith.constant 0 : i32
    return %c0_i32, %c0_i32_0 : i32, i32
  }
  func.func @transform_5(%arg0: i32, %arg1: i32) -> (i32, i32) {
    %c0_i32 = arith.constant 0 : i32
    %c0_i32_0 = arith.constant 0 : i32
    %c0_i32_1 = arith.constant 0 : i32
    return %c0_i32, %c0_i32_0 : i32, i32
  }
  func.func @transform_6(%arg0: i32, %arg1: i32) -> (i32, i32) {
    %c0_i32 = arith.constant 0 : i32
    %c0_i32_0 = arith.constant 0 : i32
    %c0_i32_1 = arith.constant 0 : i32
    return %c0_i32, %c0_i32_0 : i32, i32
  }
  func.func @transform_7(%arg0: i32, %arg1: i32) -> (i32, i32) {
    %c0_i32 = arith.constant 0 : i32
    %c0_i32_0 = arith.constant 0 : i32
    return %arg0, %c0_i32 : i32, i32
  }
}

module attributes {stable_mosaic.version = 11 : i64} {
  func.func @head_kernel(%arg0: i32, %arg1: i32, %arg2: memref<2x30x64xf32, #tpu.memory_space<vmem>>, %arg3: memref<64x32xf32, #tpu.memory_space<vmem>>, %arg4: memref<1x32xf32, #tpu.memory_space<vmem>>, %arg5: memref<1x32xf32, #tpu.memory_space<vmem>>, %arg6: memref<1x32xf32, #tpu.memory_space<vmem>>, %arg7: memref<32x128xf32, #tpu.memory_space<vmem>>, %arg8: memref<1x128xf32, #tpu.memory_space<vmem>>, %arg9: memref<2x128xf32, #tpu.memory_space<vmem>>, %arg10: memref<2x64xf32, #tpu.memory_space<vmem>>) attributes {dimension_semantics = [#tpu.dimension_semantics<parallel>, #tpu.dimension_semantics<arbitrary>], iteration_bounds = array<i64: 1, 1>, scalar_prefetch = 0 : i64, scratch_operands = 1 : i64, tpu.core_type = #tpu.core_type<tc>, window_params = [{transform_indices = @transform_0, window_bounds = array<i64: 2, 30, 64>}, {pipeline_mode = #tpu.pipeline_mode<synchronous>, transform_indices = @transform_1, window_bounds = array<i64: 64, 32>}, {pipeline_mode = #tpu.pipeline_mode<synchronous>, transform_indices = @transform_2, window_bounds = array<i64: 1, 32>}, {pipeline_mode = #tpu.pipeline_mode<synchronous>, transform_indices = @transform_3, window_bounds = array<i64: 1, 32>}, {pipeline_mode = #tpu.pipeline_mode<synchronous>, transform_indices = @transform_4, window_bounds = array<i64: 1, 32>}, {pipeline_mode = #tpu.pipeline_mode<synchronous>, transform_indices = @transform_5, window_bounds = array<i64: 32, 128>}, {pipeline_mode = #tpu.pipeline_mode<synchronous>, transform_indices = @transform_6, window_bounds = array<i64: 1, 128>}, {transform_indices = @transform_7, window_bounds = array<i64: 2, 128>}]} {
    %c0_i32 = arith.constant 0 : i32
    %0 = arith.cmpi eq, %arg1, %c0_i32 : i32
    %1 = arith.extui %0 : i1 to i32
    %c0_i32_0 = arith.constant 0 : i32
    %2 = arith.cmpi ne, %1, %c0_i32_0 : i32
    scf.if %2 {
      %cst_9 = arith.constant 0.000000e+00 : f32
      %11 = vector.broadcast %cst_9 : f32 to vector<2x64xf32>
      %c0_10 = arith.constant 0 : index
      %c0_11 = arith.constant 0 : index
      %12 = vector.load %arg10[%c0_10, %c0_11] : memref<2x64xf32, #tpu.memory_space<vmem>>, vector<2x64xf32>
      tpu.vector_store %arg10[%c0_10, %c0_11], %11 {strides = array<i32>} : memref<2x64xf32, #tpu.memory_space<vmem>>, vector<2x64xf32>,
    } else {
    }
    %c0 = arith.constant 0 : index
    %c0_1 = arith.constant 0 : index
    %c0_2 = arith.constant 0 : index
    %3 = vector.load %arg2[%c0, %c0_1, %c0_2] : memref<2x30x64xf32, #tpu.memory_space<vmem>>, vector<2x30x64xf32>
    %c0_3 = arith.constant 0 : index
    %c0_4 = arith.constant 0 : index
    %4 = vector.load %arg10[%c0_3, %c0_4] : memref<2x64xf32, #tpu.memory_space<vmem>>, vector<2x64xf32>
    %cst = arith.constant dense<0.000000e+00> : vector<2x64xf32>
    %5 = vector.multi_reduction <add>, %3, %cst [1] : vector<2x30x64xf32> to vector<2x64xf32>
    %6 = arith.addf %4, %5 : vector<2x64xf32>
    %c0_5 = arith.constant 0 : index
    %c0_6 = arith.constant 0 : index
    %7 = vector.load %arg10[%c0_5, %c0_6] : memref<2x64xf32, #tpu.memory_space<vmem>>, vector<2x64xf32>
    tpu.vector_store %arg10[%c0_5, %c0_6], %6 {strides = array<i32>} : memref<2x64xf32, #tpu.memory_space<vmem>>, vector<2x64xf32>,
    %c0_i32_7 = arith.constant 0 : i32
    %8 = arith.cmpi eq, %arg1, %c0_i32_7 : i32
    %9 = arith.extui %8 : i1 to i32
    %c0_i32_8 = arith.constant 0 : i32
    %10 = arith.cmpi ne, %9, %c0_i32_8 : i32
    scf.if %10 {
      %c0_9 = arith.constant 0 : index
      %c0_10 = arith.constant 0 : index
      %11 = vector.load %arg10[%c0_9, %c0_10] : memref<2x64xf32, #tpu.memory_space<vmem>>, vector<2x64xf32>
      %cst_11 = arith.constant 0.0333333351 : f32
      %12 = vector.broadcast %cst_11 : f32 to vector<2x64xf32>
      %13 = arith.mulf %11, %12 : vector<2x64xf32>
      %c0_12 = arith.constant 0 : index
      %c0_13 = arith.constant 0 : index
      %14 = vector.load %arg3[%c0_12, %c0_13] : memref<64x32xf32, #tpu.memory_space<vmem>>, vector<64x32xf32>
      %cst_14 = arith.constant dense<0.000000e+00> : vector<2x32xf32>
      %15 = tpu.matmul %13, %14, %cst_14 {dimension_numbers = #tpu.dot_dimension_numbers<[1], [0], [0], [1], [0, 0, 1, 1], [], []>} : vector<2x64xf32>, vector<64x32xf32>, vector<2x32xf32> -> vector<2x32xf32>
      %c0_15 = arith.constant 0 : index
      %c0_16 = arith.constant 0 : index
      %16 = vector.load %arg4[%c0_15, %c0_16] : memref<1x32xf32, #tpu.memory_space<vmem>>, vector<1x32xf32>
      %17 = vector.broadcast %16 : vector<1x32xf32> to vector<2x32xf32>
      %18 = arith.addf %15, %17 : vector<2x32xf32>
      %cst_17 = arith.constant dense<0.000000e+00> : vector<2xf32>
      %19 = vector.multi_reduction <add>, %18, %cst_17 [1] : vector<2x32xf32> to vector<2xf32>
      %20 = vector.shape_cast %19 : vector<2xf32> to vector<2x1xf32>
      %cst_18 = arith.constant 3.200000e+01 : f32
      %21 = vector.broadcast %cst_18 : f32 to vector<2x1xf32>
      %22 = arith.divf %20, %21 : vector<2x1xf32>
      %23 = vector.broadcast %22 : vector<2x1xf32> to vector<2x32xf32>
      %24 = arith.subf %18, %23 : vector<2x32xf32>
      %25 = vector.broadcast %22 : vector<2x1xf32> to vector<2x32xf32>
      %26 = arith.subf %18, %25 : vector<2x32xf32>
      %27 = arith.mulf %24, %26 : vector<2x32xf32>
      %cst_19 = arith.constant dense<0.000000e+00> : vector<2xf32>
      %28 = vector.multi_reduction <add>, %27, %cst_19 [1] : vector<2x32xf32> to vector<2xf32>
      %29 = vector.shape_cast %28 : vector<2xf32> to vector<2x1xf32>
      %cst_20 = arith.constant 3.200000e+01 : f32
      %30 = vector.broadcast %cst_20 : f32 to vector<2x1xf32>
      %31 = arith.divf %29, %30 : vector<2x1xf32>
      %32 = vector.broadcast %22 : vector<2x1xf32> to vector<2x32xf32>
      %33 = arith.subf %18, %32 : vector<2x32xf32>
      %cst_21 = arith.constant 9.99999974E-6 : f32
      %34 = vector.broadcast %cst_21 : f32 to vector<2x1xf32>
      %35 = arith.addf %31, %34 : vector<2x1xf32>
      %36 = math.rsqrt %35 : vector<2x1xf32>
      %37 = vector.broadcast %36 : vector<2x1xf32> to vector<2x32xf32>
      %38 = arith.mulf %33, %37 : vector<2x32xf32>
      %c0_22 = arith.constant 0 : index
      %c0_23 = arith.constant 0 : index
      %39 = vector.load %arg5[%c0_22, %c0_23] : memref<1x32xf32, #tpu.memory_space<vmem>>, vector<1x32xf32>
      %40 = vector.broadcast %39 : vector<1x32xf32> to vector<2x32xf32>
      %41 = arith.mulf %38, %40 : vector<2x32xf32>
      %c0_24 = arith.constant 0 : index
      %c0_25 = arith.constant 0 : index
      %42 = vector.load %arg6[%c0_24, %c0_25] : memref<1x32xf32, #tpu.memory_space<vmem>>, vector<1x32xf32>
      %43 = vector.broadcast %42 : vector<1x32xf32> to vector<2x32xf32>
      %44 = arith.addf %41, %43 : vector<2x32xf32>
      %45 = math.tanh %44 : vector<2x32xf32>
      %c0_26 = arith.constant 0 : index
      %c0_27 = arith.constant 0 : index
      %46 = vector.load %arg7[%c0_26, %c0_27] : memref<32x128xf32, #tpu.memory_space<vmem>>, vector<32x128xf32>
      %cst_28 = arith.constant dense<0.000000e+00> : vector<2x128xf32>
      %47 = tpu.matmul %45, %46, %cst_28 {dimension_numbers = #tpu.dot_dimension_numbers<[1], [0], [0], [1], [0, 0, 1, 1], [], []>} : vector<2x32xf32>, vector<32x128xf32>, vector<2x128xf32> -> vector<2x128xf32>
      %c0_29 = arith.constant 0 : index
      %c0_30 = arith.constant 0 : index
      %48 = vector.load %arg8[%c0_29, %c0_30] : memref<1x128xf32, #tpu.memory_space<vmem>>, vector<1x128xf32>
      %49 = vector.broadcast %48 : vector<1x128xf32> to vector<2x128xf32>
      %50 = arith.addf %47, %49 : vector<2x128xf32>
      %c0_31 = arith.constant 0 : index
      %c0_32 = arith.constant 0 : index
      %51 = vector.load %arg9[%c0_31, %c0_32] : memref<2x128xf32, #tpu.memory_space<vmem>>, vector<2x128xf32>
      tpu.vector_store %arg9[%c0_31, %c0_32], %50 {strides = array<i32>} : memref<2x128xf32, #tpu.memory_space<vmem>>, vector<2x128xf32>,
    } else {
    }
    return
  }
  func.func @transform_0(%arg0: i32, %arg1: i32) -> (i32, i32, i32) {
    %c0_i32 = arith.constant 0 : i32
    %c0_i32_0 = arith.constant 0 : i32
    return %arg0, %arg1, %c0_i32 : i32, i32, i32
  }
  func.func @transform_1(%arg0: i32, %arg1: i32) -> (i32, i32) {
    %c0_i32 = arith.constant 0 : i32
    %c0_i32_0 = arith.constant 0 : i32
    %c0_i32_1 = arith.constant 0 : i32
    return %c0_i32, %c0_i32_0 : i32, i32
  }
  func.func @transform_2(%arg0: i32, %arg1: i32) -> (i32, i32) {
    %c0_i32 = arith.constant 0 : i32
    %c0_i32_0 = arith.constant 0 : i32
    %c0_i32_1 = arith.constant 0 : i32
    return %c0_i32, %c0_i32_0 : i32, i32
  }
  func.func @transform_3(%arg0: i32, %arg1: i32) -> (i32, i32) {
    %c0_i32 = arith.constant 0 : i32
    %c0_i32_0 = arith.constant 0 : i32
    %c0_i32_1 = arith.constant 0 : i32
    return %c0_i32, %c0_i32_0 : i32, i32
  }
  func.func @transform_4(%arg0: i32, %arg1: i32) -> (i32, i32) {
    %c0_i32 = arith.constant 0 : i32
    %c0_i32_0 = arith.constant 0 : i32
    %c0_i32_1 = arith.constant 0 : i32
    return %c0_i32, %c0_i32_0 : i32, i32
  }
  func.func @transform_5(%arg0: i32, %arg1: i32) -> (i32, i32) {
    %c0_i32 = arith.constant 0 : i32
    %c0_i32_0 = arith.constant 0 : i32
    %c0_i32_1 = arith.constant 0 : i32
    return %c0_i32, %c0_i32_0 : i32, i32
  }
  func.func @transform_6(%arg0: i32, %arg1: i32) -> (i32, i32) {
    %c0_i32 = arith.constant 0 : i32
    %c0_i32_0 = arith.constant 0 : i32
    %c0_i32_1 = arith.constant 0 : i32
    return %c0_i32, %c0_i32_0 : i32, i32
  }
  func.func @transform_7(%arg0: i32, %arg1: i32) -> (i32, i32) {
    %c0_i32 = arith.constant 0 : i32
    %c0_i32_0 = arith.constant 0 : i32
    return %arg0, %c0_i32 : i32, i32
  }
}

</mosaic_0001>

<bundles_post_ra>
// kernel: tpu_custom_call.1
= control target key start
LH: loop header
LB: loop body
LE: loop exit
PB: predicated region body
PF: predicated region fallthrough
CT: control target
= control target key end

     0   :  { %vm31_vm0 = vcmask 517120   ;;  %v382_v1 = vmov 0.0   ;;  %vm383_vm1 = vmmov 0   ;;  %vm42_vm2 = vcmask 523264   ;;  %s526_s0 = inlined_call_operand.vmem [shape: f32[2,30,64], index: 0, kind: input, shape index: {}]   ;;  %s527_s1 = inlined_call_operand.vmem [shape: f32[64,32], index: 1, kind: input, shape index: {}]   ;;  %s528_s2 = inlined_call_operand.vmem [shape: f32[1,32], index: 2, kind: input, shape index: {}]   ;;  %s529_s3 = inlined_call_operand.vmem [shape: f32[1,32], index: 3, kind: input, shape index: {}]   ;;  %s530_s4 = inlined_call_operand.vmem [shape: f32[1,32], index: 4, kind: input, shape index: {}]   ;;  %s531_s5 = inlined_call_operand.vmem [shape: f32[32,128], index: 5, kind: input, shape index: {}]   ;;  %s532_s6 = inlined_call_operand.vmem [shape: f32[1,128], index: 6, kind: input, shape index: {}]   ;;  %s533_s7 = inlined_call_operand.hbm [shape: f32[2,128], index: 7, kind: output, shape index: {}]  }
   0x1   :  { %v90_v0 = vld [vmem:[%s527_s1 + $0x38] sm:$0xff]  ;;  %323 = vmatprep.subr.mxu0 %v382_v1  ;;  %v89_v2 = vld [vmem:[%s527_s1 + $0x30] sm:$0xff]  ;;  %339 = vmatprep.mubr.msk.f32.mxu0 %vm383_vm1, %v382_v1  ;;  %32 = vst.msk [vmem:[#allocation2] sm:$0x3] %vm31_vm0, %v382_v1  ;;  %v88_v3 = vld [vmem:[%s527_s1 + $0x28] sm:$0xff]  ;;  %vm48_vm3 = vcmask 521216  }
   0x2   :  { %324 = vmatpush3.msra.mxu0 %v90_v0  ;;  %v33_v4 = vld [vmem:[%s526_s0] sm:$0xff]  ;;  %342 = vmatprep.subr.mxu1 %v382_v1  ;;  %v34_v5 = vld [vmem:[%s526_s0 + $0x8] sm:$0xff]  ;;  %v35_v6 = vld [vmem:[%s526_s0 + $0x10] sm:$0xff] }
   0x3   :  { %325 = vmatprep.subr.mxu0 %v382_v1  ;;  %v36_v7 = vld [vmem:[%s526_s0 + $0x18] sm:$0x3f]  ;;  %v43_v8 = vsel %vm42_vm2, %v33_v4, 0.0  ;;  %350 = vmatprep.mubr.msk.f32.mxu1 %vm383_vm1, %v382_v1  ;;  %v37_v9 = vld [vmem:[%s526_s0 + $0x20] sm:$0xff]  ;;  %v38_v10 = vld [vmem:[%s526_s0 + $0x28] sm:$0xff]  ;;  %v44_v12 = vsel %vm42_vm2, %v34_v5, 0.0 }
   0x4   :  { %326 = vmatpush3.msra.mxu0 %v89_v2  ;;  %v39_v11 = vld [vmem:[%s526_s0 + $0x30] sm:$0xff]  ;;  %v46_v13 = vsel %vm42_vm2, %v35_v6, 0.0  ;;  %v87_v14 = vld [vmem:[%s527_s1 + $0x20] sm:$0xff]  ;;  %v40_v15 = vld [vmem:[%s526_s0 + $0x38] sm:$0x3f]  ;;  %v45_v16 = vadd.f32 %v44_v12, %v43_v8  ;;  %v57_v17 = vsel %vm42_vm2, %v37_v9, 0.0 }
   0x5   :  { %327 = vmatprep.subr.mxu0 %v382_v1  ;;  %v58_v18 = vsel %vm42_vm2, %v38_v10, 0.0  ;;  %v60_v19 = vsel %vm42_vm2, %v39_v11, 0.0  ;;  %v49_v20 = vsel %vm48_vm3, %v36_v7, 0.0 }
   0x6   :  { %328 = vmatpush3.msra.mxu0 %v88_v3  ;;  %v59_v21 = vadd.f32 %v58_v18, %v57_v17 }
   0x7   :  { %12 = vsyncpa [#allocation4], 0  ;;  %329 = vmatprep.subr.mxu0 %v382_v1  ;;  %v86_v22 = vld [vmem:[%s527_s1 + $0x18] sm:$0xff]  ;;  %v47_v23 = vadd.f32 %v46_v13, %v45_v16  ;;  %v62_v24 = vsel %vm48_vm3, %v40_v15, 0.0  ;;  %v85_v26 = vld [vmem:[%s527_s1 + $0x10] sm:$0xff]  ;;  %vm72_vm4 = vcmask 1041409  }
   0x8   :  { %330 = vmatpush3.msra.mxu0 %v87_v14  ;;  %v61_v25 = vadd.f32 %v60_v19, %v59_v21  ;;  %v84_v29 = vld [vmem:[%s527_s1 + $0x8] sm:$0xff]  ;;  %v83_v32 = vld [vmem:[%s527_s1] sm:$0xff]  ;;  %vm171_vm5 = vcmask 254976   ;;  %v206_v58 = vld [vmem:[%s531_s5 + $0x18] sm:$0xff]  ;;  %vm214_vm6 = vcmask 261120   ;;  %s384_s22 = smov [#allocation3]  }
   0x9   :  { %331 = vmatprep.subr.mxu0 %v382_v1  ;;  %v50_v27 = vadd.f32 %v49_v20, %v47_v23  ;;  %v41_v42 = vld [vmem:[#allocation2] sm:$0x3]  ;;  %v205_v59 = vld [vmem:[%s531_s5 + $0x10] sm:$0xff]  ;;  %343 = vmatpush3.msra.mxu1 %v206_v58  ;;  %v204_v60 = vld [vmem:[%s531_s5 + $0x8] sm:$0xff]  ;;  %s295_s23 = sshll.u32 %s384_s22, 4  ;;  %s296_s23 = int_to_ptr.vmem [resolvable:$true] %s295_s23 }
   0xa   :  { %332 = vmatpush3.msra.mxu0 %v86_v22  ;;  %v63_v28 = vadd.f32 %v62_v24, %v61_v25  ;;  %v303_v48 = vld [vmem:[%s528_s2] ss:$0 sm:$0xff]  ;;  %344 = vmatprep.subr.mxu1 %v382_v1  ;;  %p365_p1 = scmp.lt.s32.totalorder %s296_s23, %s296_s23 }
   0xb   :  { %333 = vmatprep.subr.mxu0 %v382_v1  ;;  %v51_v30 = vrot.slane %v50_v27, 4  ;;  %345 = vmatpush3.msra.mxu1 %v205_v59  ;;  %v203_v61 = vld [vmem:[%s531_s5] sm:$0xff] }
   0xc   :  { %334 = vmatpush3.msra.mxu0 %v85_v26  ;;  %v64_v31 = vrot.slane %v63_v28, 4  ;;  %346 = vmatprep.subr.mxu1 %v382_v1  ;;  %v305_v3 = vld [vmem:[%s529_s3] ss:$0 sm:$0xff]  ;;  %s360_s3 = scalar_lea.vmem %s296_s23, 32 }
   0xd   :  { %335 = vmatprep.subr.mxu0 %v382_v1  ;;  %v52_v33 = vadd.f32 %v51_v30, %v50_v27  ;;  %347 = vmatpush3.msra.mxu1 %v204_v60  ;;  %v306_v5 = vld [vmem:[%s530_s4] ss:$0 sm:$0xff]  ;;  %p361_p0 = scmp.ne.s32.totalorder %s296_s23, %s360_s3  ;;  %p366_p2 = scmp.lt.s32.totalorder %s360_s3, %s360_s3 }
   0xe   :  { %336 = vmatpush3.msra.mxu0 %v84_v29  ;;  %v65_v34 = vadd.f32 %v64_v31, %v63_v28  ;;  %348 = vmatprep.subr.mxu1 %v382_v1  ;;  %v307_v8 = vld [vmem:[%s532_s6] ss:$0 sm:$0xff] }
   0xf   :  { %337 = vmatprep.subr.mxu0 %v382_v1  ;;  %v53_v35 = vrot.slane %v52_v33, 2  ;;  %349 = vmatpush3.msra.mxu1 %v203_v61  ;;  %p367_p3 = por %p366_p2, %p365_p1 }
  0x10   :  { %338 = vmatpush3.msra.mxu0 %v83_v32  ;;  %v66_v36 = vrot.slane %v65_v34, 2 }
  0x11   :  { %v54_v37 = vadd.f32 %v53_v35, %v52_v33  ;;  %p368_p4 = pnand %p367_p3, %p361_p0 }
  0x12   :  { %v67_v38 = vadd.f32 %v66_v36, %v65_v34 }
  0x13   :  { %v55_v39 = vrot.slane %v54_v37, 1 }
  0x14   :  { %v68_v40 = vrot.slane %v67_v38, 1 }
  0x15   :  { %v56_v41 = vadd.f32 %v55_v39, %v54_v37 }
  0x16   :  { %v69_v43 = vadd.f32 %v68_v40, %v67_v38 }
  0x18   :  { %v73_v44 = vsel %vm72_vm4, %v69_v43, %v56_v41 }
  0x19   :  { %v75_v45 = vadd.f32 %v73_v44, %v41_v42 }
  0x1b   :  { %77 = vst.msk [vmem:[#allocation2] sm:$0x3] %vm31_vm0, %v75_v45 }
  0x22   :  { %v81_v46 = vld [vmem:[#allocation2] sm:$0x3] }
  0x23   :  { %v82_v47 = vmul.f32 0.033333335, %v81_v46 }
  0x25   :  { %340 = vmatmul.mubr.msk.f32.vlgmr.msra.gmra.mxu0 %vm42_vm2, %v82_v47 }
  0xe5   :  { %v167_v49 = vpop.f32.mrf.mxu0 }
  0xe6   :  { %v168_v50 = vadd.f32 %v303_v48, %v167_v49 }
  0xe7   :  { %v341_v51 = vpop.f32.mrf.mxu0 }
  0xe8   :  { %v172_v52 = vsel %vm171_vm5, %v168_v50, 0.0 }
  0xe9   :  { %173 = vadd.xlane.f32.xlu0 %v172_v52 }
 0x172   :  { %v174_v53 = vpop.xlane.xlu0 %173 }
 0x173   :  { %v176_v54 = vmul.f32 0.03125, %v174_v53 }
 0x175   :  { %v177_v55 = vsub.f32 %v168_v50, %v176_v54 }
 0x177   :  { %v178_v56 = vmul.f32 %v177_v55, %v177_v55 }
 0x179   :  { %v179_v57 = vsel %vm171_vm5, %v178_v56, 0.0 }
 0x17a   :  { %180 = vadd.xlane.f32.xlu0 %v179_v57 }
 0x203   :  { %v181_v62 = vpop.xlane.xlu0 %180 }
 0x204   :  { %v182_v63 = vmul.f32 0.03125, %v181_v62 }
 0x206   :  { %v183_v0 = vadd.f32 1e-05, %v182_v63 }
 0x208   :  { %356 = vrsqrt.f32 %v183_v0 }
 0x215   :  { %v357_v2 = vpop.eup %356 }
 0x216   :  { %v185_v4 = vmul.f32 %v357_v2, %v177_v55 }
 0x218   :  { %v193_v6 = vmul.f32 %v305_v3, %v185_v4 }
 0x21a   :  { %v201_v7 = vadd.f32 %v306_v5, %v193_v6 }
 0x21c   :  { %358 = vtanh.f32 %v201_v7 }
 0x229   :  { %v359_v1 = vpop.eup %358 }
 0x22a   :  { %351 = vmatmul.mubr.msk.f32.vlgmr.msra.gmra.mxu1 %vm214_vm6, %v359_v1 }
 0x2ea   :  { %v284_v9 = vpop.f32.mrf.mxu1 }
 0x2eb   :  { %v285_v10 = vadd.f32 %v307_v8, %v284_v9 }
 0x2ec   :  { %v352_v11 = vpop.f32.mrf.mxu1 }
 0x2ed   :  { %288 = vst [vmem:[#allocation3] sm:$0x3] %v285_v10 }
 0x2ee   :  { %371 = shalt.err (!%p368_p4)
}
 0x2ef   :  { %298 = dma.vmem_to_hbm [thread:$0]  %s296_s23, 32, %s533_s7, [#allocation4]  }
 0x2f0   :  { %380 = dma.done.wait [#allocation4], 32  }
 0x2f1   :  { %381 = vsyncadd [#allocation4], 4294967264 }
 0x2f2   :  { %302 = vsyncpa [#allocation4], 1 }

// kernel: tpu_custom_call.1
= control target key start
LH: loop header
LB: loop body
LE: loop exit
PB: predicated region body
PF: predicated region fallthrough
CT: control target
= control target key end

     0   :  { %vm31_vm0 = vcmask 517120   ;;  %v382_v1 = vmov 0.0   ;;  %vm383_vm1 = vmmov 0   ;;  %vm42_vm2 = vcmask 523264   ;;  %s526_s0 = inlined_call_operand.vmem [shape: f32[2,30,64], index: 0, kind: input, shape index: {}]   ;;  %s527_s1 = inlined_call_operand.vmem [shape: f32[64,32], index: 1, kind: input, shape index: {}]   ;;  %s528_s2 = inlined_call_operand.vmem [shape: f32[1,32], index: 2, kind: input, shape index: {}]   ;;  %s529_s3 = inlined_call_operand.vmem [shape: f32[1,32], index: 3, kind: input, shape index: {}]   ;;  %s530_s4 = inlined_call_operand.vmem [shape: f32[1,32], index: 4, kind: input, shape index: {}]   ;;  %s531_s5 = inlined_call_operand.vmem [shape: f32[32,128], index: 5, kind: input, shape index: {}]   ;;  %s532_s6 = inlined_call_operand.vmem [shape: f32[1,128], index: 6, kind: input, shape index: {}]   ;;  %s533_s7 = inlined_call_operand.hbm [shape: f32[2,128], index: 7, kind: output, shape index: {}]  }
   0x1   :  { %v90_v0 = vld [vmem:[%s527_s1 + $0x38] sm:$0xff]  ;;  %323 = vmatprep.subr.mxu0 %v382_v1  ;;  %v89_v2 = vld [vmem:[%s527_s1 + $0x30] sm:$0xff]  ;;  %339 = vmatprep.mubr.msk.f32.mxu0 %vm383_vm1, %v382_v1  ;;  %32 = vst.msk [vmem:[#allocation2] sm:$0x3] %vm31_vm0, %v382_v1  ;;  %v88_v3 = vld [vmem:[%s527_s1 + $0x28] sm:$0xff]  ;;  %vm48_vm3 = vcmask 521216  }
   0x2   :  { %324 = vmatpush3.msra.mxu0 %v90_v0  ;;  %v33_v4 = vld [vmem:[%s526_s0] sm:$0xff]  ;;  %342 = vmatprep.subr.mxu1 %v382_v1  ;;  %v34_v5 = vld [vmem:[%s526_s0 + $0x8] sm:$0xff]  ;;  %v35_v6 = vld [vmem:[%s526_s0 + $0x10] sm:$0xff] }
   0x3   :  { %325 = vmatprep.subr.mxu0 %v382_v1  ;;  %v36_v7 = vld [vmem:[%s526_s0 + $0x18] sm:$0x3f]  ;;  %v43_v8 = vsel %vm42_vm2, %v33_v4, 0.0  ;;  %350 = vmatprep.mubr.msk.f32.mxu1 %vm383_vm1, %v382_v1  ;;  %v37_v9 = vld [vmem:[%s526_s0 + $0x20] sm:$0xff]  ;;  %v38_v10 = vld [vmem:[%s526_s0 + $0x28] sm:$0xff]  ;;  %v44_v12 = vsel %vm42_vm2, %v34_v5, 0.0 }
   0x4   :  { %326 = vmatpush3.msra.mxu0 %v89_v2  ;;  %v39_v11 = vld [vmem:[%s526_s0 + $0x30] sm:$0xff]  ;;  %v46_v13 = vsel %vm42_vm2, %v35_v6, 0.0  ;;  %v87_v14 = vld [vmem:[%s527_s1 + $0x20] sm:$0xff]  ;;  %v40_v15 = vld [vmem:[%s526_s0 + $0x38] sm:$0x3f]  ;;  %v45_v16 = vadd.f32 %v44_v12, %v43_v8  ;;  %v57_v17 = vsel %vm42_vm2, %v37_v9, 0.0 }
   0x5   :  { %327 = vmatprep.subr.mxu0 %v382_v1  ;;  %v58_v18 = vsel %vm42_vm2, %v38_v10, 0.0  ;;  %v60_v19 = vsel %vm42_vm2, %v39_v11, 0.0  ;;  %v49_v20 = vsel %vm48_vm3, %v36_v7, 0.0 }
   0x6   :  { %328 = vmatpush3.msra.mxu0 %v88_v3  ;;  %v59_v21 = vadd.f32 %v58_v18, %v57_v17 }
   0x7   :  { %12 = vsyncpa [#allocation4], 0  ;;  %329 = vmatprep.subr.mxu0 %v382_v1  ;;  %v86_v22 = vld [vmem:[%s527_s1 + $0x18] sm:$0xff]  ;;  %v47_v23 = vadd.f32 %v46_v13, %v45_v16  ;;  %v62_v24 = vsel %vm48_vm3, %v40_v15, 0.0  ;;  %v85_v26 = vld [vmem:[%s527_s1 + $0x10] sm:$0xff]  ;;  %vm72_vm4 = vcmask 1041409  }
   0x8   :  { %330 = vmatpush3.msra.mxu0 %v87_v14  ;;  %v61_v25 = vadd.f32 %v60_v19, %v59_v21  ;;  %v84_v29 = vld [vmem:[%s527_s1 + $0x8] sm:$0xff]  ;;  %v83_v32 = vld [vmem:[%s527_s1] sm:$0xff]  ;;  %vm171_vm5 = vcmask 254976   ;;  %v206_v58 = vld [vmem:[%s531_s5 + $0x18] sm:$0xff]  ;;  %vm214_vm6 = vcmask 261120   ;;  %s384_s22 = smov [#allocation3]  }
   0x9   :  { %331 = vmatprep.subr.mxu0 %v382_v1  ;;  %v50_v27 = vadd.f32 %v49_v20, %v47_v23  ;;  %v41_v42 = vld [vmem:[#allocation2] sm:$0x3]  ;;  %v205_v59 = vld [vmem:[%s531_s5 + $0x10] sm:$0xff]  ;;  %343 = vmatpush3.msra.mxu1 %v206_v58  ;;  %v204_v60 = vld [vmem:[%s531_s5 + $0x8] sm:$0xff]  ;;  %s295_s23 = sshll.u32 %s384_s22, 4  ;;  %s296_s23 = int_to_ptr.vmem [resolvable:$true] %s295_s23 }
   0xa   :  { %332 = vmatpush3.msra.mxu0 %v86_v22  ;;  %v63_v28 = vadd.f32 %v62_v24, %v61_v25  ;;  %v303_v48 = vld [vmem:[%s528_s2] ss:$0 sm:$0xff]  ;;  %344 = vmatprep.subr.mxu1 %v382_v1  ;;  %p365_p1 = scmp.lt.s32.totalorder %s296_s23, %s296_s23 }
   0xb   :  { %333 = vmatprep.subr.mxu0 %v382_v1  ;;  %v51_v30 = vrot.slane %v50_v27, 4  ;;  %345 = vmatpush3.msra.mxu1 %v205_v59  ;;  %v203_v61 = vld [vmem:[%s531_s5] sm:$0xff] }
   0xc   :  { %334 = vmatpush3.msra.mxu0 %v85_v26  ;;  %v64_v31 = vrot.slane %v63_v28, 4  ;;  %346 = vmatprep.subr.mxu1 %v382_v1  ;;  %v305_v3 = vld [vmem:[%s529_s3] ss:$0 sm:$0xff]  ;;  %s360_s3 = scalar_lea.vmem %s296_s23, 32 }
   0xd   :  { %335 = vmatprep.subr.mxu0 %v382_v1  ;;  %v52_v33 = vadd.f32 %v51_v30, %v50_v27  ;;  %347 = vmatpush3.msra.mxu1 %v204_v60  ;;  %v306_v5 = vld [vmem:[%s530_s4] ss:$0 sm:$0xff]  ;;  %p361_p0 = scmp.ne.s32.totalorder %s296_s23, %s360_s3  ;;  %p366_p2 = scmp.lt.s32.totalorder %s360_s3, %s360_s3 }
   0xe   :  { %336 = vmatpush3.msra.mxu0 %v84_v29  ;;  %v65_v34 = vadd.f32 %v64_v31, %v63_v28  ;;  %348 = vmatprep.subr.mxu1 %v382_v1  ;;  %v307_v8 = vld [vmem:[%s532_s6] ss:$0 sm:$0xff] }
   0xf   :  { %337 = vmatprep.subr.mxu0 %v382_v1  ;;  %v53_v35 = vrot.slane %v52_v33, 2  ;;  %349 = vmatpush3.msra.mxu1 %v203_v61  ;;  %p367_p3 = por %p366_p2, %p365_p1 }
  0x10   :  { %338 = vmatpush3.msra.mxu0 %v83_v32  ;;  %v66_v36 = vrot.slane %v65_v34, 2 }
  0x11   :  { %v54_v37 = vadd.f32 %v53_v35, %v52_v33  ;;  %p368_p4 = pnand %p367_p3, %p361_p0 }
  0x12   :  { %v67_v38 = vadd.f32 %v66_v36, %v65_v34 }
  0x13   :  { %v55_v39 = vrot.slane %v54_v37, 1 }
  0x14   :  { %v68_v40 = vrot.slane %v67_v38, 1 }
  0x15   :  { %v56_v41 = vadd.f32 %v55_v39, %v54_v37 }
  0x16   :  { %v69_v43 = vadd.f32 %v68_v40, %v67_v38 }
  0x18   :  { %v73_v44 = vsel %vm72_vm4, %v69_v43, %v56_v41 }
  0x19   :  { %v75_v45 = vadd.f32 %v73_v44, %v41_v42 }
  0x1b   :  { %77 = vst.msk [vmem:[#allocation2] sm:$0x3] %vm31_vm0, %v75_v45 }
  0x22   :  { %v81_v46 = vld [vmem:[#allocation2] sm:$0x3] }
  0x23   :  { %v82_v47 = vmul.f32 0.033333335, %v81_v46 }
  0x25   :  { %340 = vmatmul.mubr.msk.f32.vlgmr.msra.gmra.mxu0 %vm42_vm2, %v82_v47 }
  0xe5   :  { %v167_v49 = vpop.f32.mrf.mxu0 }
  0xe6   :  { %v168_v50 = vadd.f32 %v303_v48, %v167_v49 }
  0xe7   :  { %v341_v51 = vpop.f32.mrf.mxu0 }
  0xe8   :  { %v172_v52 = vsel %vm171_vm5, %v168_v50, 0.0 }
  0xe9   :  { %173 = vadd.xlane.f32.xlu0 %v172_v52 }
 0x172   :  { %v174_v53 = vpop.xlane.xlu0 %173 }
 0x173   :  { %v176_v54 = vmul.f32 0.03125, %v174_v53 }
 0x175   :  { %v177_v55 = vsub.f32 %v168_v50, %v176_v54 }
 0x177   :  { %v178_v56 = vmul.f32 %v177_v55, %v177_v55 }
 0x179   :  { %v179_v57 = vsel %vm171_vm5, %v178_v56, 0.0 }
 0x17a   :  { %180 = vadd.xlane.f32.xlu0 %v179_v57 }
 0x203   :  { %v181_v62 = vpop.xlane.xlu0 %180 }
 0x204   :  { %v182_v63 = vmul.f32 0.03125, %v181_v62 }
 0x206   :  { %v183_v0 = vadd.f32 1e-05, %v182_v63 }
 0x208   :  { %356 = vrsqrt.f32 %v183_v0 }
 0x215   :  { %v357_v2 = vpop.eup %356 }
 0x216   :  { %v185_v4 = vmul.f32 %v357_v2, %v177_v55 }
 0x218   :  { %v193_v6 = vmul.f32 %v305_v3, %v185_v4 }
 0x21a   :  { %v201_v7 = vadd.f32 %v306_v5, %v193_v6 }
 0x21c   :  { %358 = vtanh.f32 %v201_v7 }
 0x229   :  { %v359_v1 = vpop.eup %358 }
 0x22a   :  { %351 = vmatmul.mubr.msk.f32.vlgmr.msra.gmra.mxu1 %vm214_vm6, %v359_v1 }
 0x2ea   :  { %v284_v9 = vpop.f32.mrf.mxu1 }
 0x2eb   :  { %v285_v10 = vadd.f32 %v307_v8, %v284_v9 }
 0x2ec   :  { %v352_v11 = vpop.f32.mrf.mxu1 }
 0x2ed   :  { %288 = vst [vmem:[#allocation3] sm:$0x3] %v285_v10 }
 0x2ee   :  { %371 = shalt.err (!%p368_p4)
}
 0x2ef   :  { %298 = dma.vmem_to_hbm [thread:$0]  %s296_s23, 32, %s533_s7, [#allocation4]  }
 0x2f0   :  { %380 = dma.done.wait [#allocation4], 32  }
 0x2f1   :  { %381 = vsyncadd [#allocation4], 4294967264 }
 0x2f2   :  { %302 = vsyncpa [#allocation4], 1 }

</bundles_post_ra>
